<compile_context>
chip_gen: v7x
topology: tpu7x:2x2x1
jax: 0.10.0
libtpu: 0.0.40
codegen_flags: <defaults>
</compile_context>

<pallas_src>
import functools

import jax
import jax.numpy as jnp
from jax.experimental import pallas as pl
from jax.experimental.pallas import tpu as pltpu


def _round_up(x: int, m: int) -> int:
    return ((x + m - 1) // m) * m


def _pick_tile(padded_dim: int, max_tile: int, gran: int) -> int:
    """Largest multiple of `gran` that divides `padded_dim` and is <= max_tile."""
    best = gran
    t = gran
    limit = min(max_tile, padded_dim)
    while t <= limit:
        if padded_dim % t == 0:
            best = t
        t += gran
    return best


def _linear_kernel(x_ref, w_ref, b_ref, o_ref):
    """One (tm, tn) f32 output tile, accumulated in-place over the K grid axis.

    x_ref: (tm, tk)  activations (bf16 or f32)
    w_ref: (tk, tn)  weight, pre-transposed to [In, Out] (bf16 or f32)
    b_ref: (1,  tn)  bias (f32)
    o_ref: (tm, tn)  f32 output tile; resident across k (index_map ignores k)
    """
    k = pl.program_id(2)

    @pl.when(k == 0)
    def _():
        # Initialise with the bias; the K-loop then accumulates on top.
        o_ref[...] = jnp.broadcast_to(b_ref[...], o_ref.shape).astype(o_ref.dtype)

    o_ref[...] += jnp.dot(
        x_ref[...], w_ref[...], preferred_element_type=jnp.float32
    )


@functools.partial(
    jax.jit, static_argnames=("tm", "tn", "tk", "compute_dtype")
)
def linear_encoder(x, weight, bias, *, tm=512, tn=512, tk=1024,
                   compute_dtype=jnp.bfloat16):
    """y = x @ weight.T + bias  (PyTorch nn.Linear forward).

    x:      [B, In]   f32
    weight: [Out, In] f32 (PyTorch layout)
    bias:   [Out]     f32
    Returns f32 [B, Out].  MXU operands are cast to `compute_dtype`
    (default bf16) with f32 accumulation.
    """
    B, K = x.shape
    N = weight.shape[0]

    xb = jnp.dtype(compute_dtype).itemsize
    # Sublane packing granularity: (8,128) f32, (16,128) bf16, (32,128) int8/fp8.
    m_gran = {4: 8, 2: 16, 1: 32}[xb]

    # Padded problem dims (lane dims to 128, M to the packed-sublane multiple).
    Mp = _round_up(B, m_gran)
    Kp = _round_up(K, 128)
    Np = _round_up(N, 128)

    # Tiles: divisors of the padded dims so no extra padding is introduced
    # beyond the 128/sublane alignment itself.
    tm = _pick_tile(Mp, tm, m_gran)
    tn = _pick_tile(Np, tn, 128)
    tk = _pick_tile(Kp, tk, 128)

    # v7x has 2 TensorCores: make sure the parallel (M, N) grid has >= 2
    # blocks when the problem allows it.
    if (Mp // tm) * (Np // tn) == 1:
        if Np >= 2 * 128:
            tn = _pick_tile(Np, Np // 2, 128)
        elif Mp >= 2 * m_gran:
            tm = _pick_tile(Mp, Mp // 2, m_gran)

    # Cast (and for the weight: transpose) once in the wrapper; pad only if
    # the problem is genuinely unaligned.
    x_c = x.astype(compute_dtype)
    x_p = x_c if (Mp == B and Kp == K) else jnp.pad(
        x_c, ((0, Mp - B), (0, Kp - K)))

    w_t = weight.T.astype(compute_dtype)          # [In, Out]
    w_p = w_t if (Kp == K and Np == N) else jnp.pad(
        w_t, ((0, Kp - K), (0, Np - N)))

    b_f32 = bias.astype(jnp.float32)
    b_p = (b_f32 if Np == N else jnp.pad(b_f32, (0, Np - N))).reshape(1, Np)

    grid = (Mp // tm, Np // tn, Kp // tk)
    gm, gn, gk = grid

    # Realistic cost estimate (dtype-aware, counts re-reads).
    cost = pl.CostEstimate(
        flops=2 * Mp * Np * Kp,
        transcendentals=0,
        bytes_accessed=(
            Mp * Kp * xb * gn      # x streamed once per N tile
            + Kp * Np * xb * gm    # weight streamed once per M tile
            + Np * 4 * gm          # bias
            + Mp * Np * 4          # f32 output written once
        ),
    )

    # Explicit VMEM budget: double-buffered x/w/bias tiles + output block,
    # with headroom; kept comfortably under v7x's 64 MiB physical VMEM.
    tile_bytes = 2 * (tm * tk * xb + tk * tn * xb + tn * 4) + 2 * (tm * tn * 4)
    vmem_limit = min(max(int(tile_bytes * 1.5) + (4 << 20), 32 << 20), 60 << 20)

    out_p = pl.pallas_call(
        _linear_kernel,
        out_shape=jax.ShapeDtypeStruct((Mp, Np), jnp.float32),
        grid_spec=pltpu.PrefetchScalarGridSpec(
            num_scalar_prefetch=0,
            grid=grid,
            in_specs=[
                pl.BlockSpec((tm, tk), lambda i, j, k: (i, k)),  # x
                pl.BlockSpec((tk, tn), lambda i, j, k: (k, j)),  # weight.T
                pl.BlockSpec((1, tn), lambda i, j, k: (0, j)),   # bias
            ],
            out_specs=pl.BlockSpec((tm, tn), lambda i, j, k: (i, j)),
        ),
        compiler_params=pltpu.CompilerParams(
            dimension_semantics=("parallel", "parallel", "arbitrary"),
            vmem_limit_bytes=vmem_limit,
        ),
        cost_estimate=cost,
    )(x_p, w_p, b_p)

    return out_p[:B, :N]


if __name__ == "__main__":
    # Small shapes consistent with the module: batch=8, num_inputs=32, num_outputs=16
    B, num_inputs, num_outputs = 8, 32, 16

    key = jax.random.PRNGKey(0)
    kx, kw, kb = jax.random.split(key, 3)

    # Deterministic parameter init (PyTorch nn.Linear default: U(-1/sqrt(in), 1/sqrt(in)))
    bound = 1.0 / (num_inputs ** 0.5)
    weight = jax.random.uniform(
        kw, (num_outputs, num_inputs), jnp.float32, minval=-bound, maxval=bound
    )
    bias = jax.random.uniform(
        kb, (num_outputs,), jnp.float32, minval=-bound, maxval=bound
    )
    x = jax.random.normal(kx, (B, num_inputs), jnp.float32)

    y = linear_encoder(x, weight, bias)
    y = jax.block_until_ready(y)
    assert y.shape == (B, num_outputs)
    assert y.dtype == jnp.float32

    # Exact-path check against a bf16-operand / f32-accumulate reference.
    y_ref_bf16 = (
        jnp.dot(
            x.astype(jnp.bfloat16),
            weight.astype(jnp.bfloat16).T,
            preferred_element_type=jnp.float32,
        )
        + bias
    )
    assert jnp.allclose(y, y_ref_bf16, atol=1e-3, rtol=1e-3)

    # Semantic check against the full-precision f32 reference (bf16 input
    # rounding only).
    y_ref_f32 = x @ weight.T + bias
    assert jnp.allclose(y, y_ref_f32, atol=3e-2, rtol=3e-2)

    print("KERNEL_OK")
</pallas_src>

<mosaic_0001>
module attributes {stable_mosaic.version = 11 : i64} {
  func.func @_linear_kernel(%arg0: i32, %arg1: i32, %arg2: i32, %arg3: memref<16x128xbf16, #tpu.memory_space<vmem>>, %arg4: memref<128x128xbf16, #tpu.memory_space<vmem>>, %arg5: memref<1x128xf32, #tpu.memory_space<vmem>>, %arg6: memref<16x128xf32, #tpu.memory_space<vmem>>) attributes {dimension_semantics = [#tpu.dimension_semantics<parallel>, #tpu.dimension_semantics<parallel>, #tpu.dimension_semantics<arbitrary>], iteration_bounds = array<i64: 1, 1, 1>, scalar_prefetch = 0 : i64, scratch_operands = 0 : i64, tpu.core_type = #tpu.core_type<tc>, window_params = [{transform_indices = @transform_0, window_bounds = array<i64: 16, 128>}, {transform_indices = @transform_1, window_bounds = array<i64: 128, 128>}, {transform_indices = @transform_2, window_bounds = array<i64: 1, 128>}, {transform_indices = @transform_3, window_bounds = array<i64: 16, 128>}]} {
    %c0_i32 = arith.constant 0 : i32
    %0 = arith.cmpi eq, %arg2, %c0_i32 : i32
    %1 = arith.extui %0 : i1 to i32
    %c0_i32_0 = arith.constant 0 : i32
    %2 = arith.cmpi ne, %1, %c0_i32_0 : i32
    scf.if %2 {
      %c0_8 = arith.constant 0 : index
      %c0_9 = arith.constant 0 : index
      %9 = vector.load %arg5[%c0_8, %c0_9] : memref<1x128xf32, #tpu.memory_space<vmem>>, vector<1x128xf32>
      %10 = vector.shape_cast %9 : vector<1x128xf32> to vector<1x128xf32>
      %11 = vector.broadcast %10 : vector<1x128xf32> to vector<16x128xf32>
      %c0_10 = arith.constant 0 : index
      %c0_11 = arith.constant 0 : index
      %12 = vector.load %arg6[%c0_10, %c0_11] : memref<16x128xf32, #tpu.memory_space<vmem>>, vector<16x128xf32>
      tpu.vector_store %arg6[%c0_10, %c0_11], %11 {strides = array<i32>} : memref<16x128xf32, #tpu.memory_space<vmem>>, vector<16x128xf32>,
    } else {
    }
    %c0 = arith.constant 0 : index
    %c0_1 = arith.constant 0 : index
    %3 = vector.load %arg6[%c0, %c0_1] : memref<16x128xf32, #tpu.memory_space<vmem>>, vector<16x128xf32>
    %c0_2 = arith.constant 0 : index
    %c0_3 = arith.constant 0 : index
    %4 = vector.load %arg3[%c0_2, %c0_3] : memref<16x128xbf16, #tpu.memory_space<vmem>>, vector<16x128xbf16>
    %c0_4 = arith.constant 0 : index
    %c0_5 = arith.constant 0 : index
    %5 = vector.load %arg4[%c0_4, %c0_5] : memref<128x128xbf16, #tpu.memory_space<vmem>>, vector<128x128xbf16>
    %cst = arith.constant dense<0.000000e+00> : vector<16x128xf32>
    %6 = tpu.matmul %4, %5, %cst {dimension_numbers = #tpu.dot_dimension_numbers<[1], [0], [0], [1], [0, 0, 1, 1], [], []>} : vector<16x128xbf16>, vector<128x128xbf16>, vector<16x128xf32> -> vector<16x128xf32>
    %7 = arith.addf %3, %6 : vector<16x128xf32>
    %c0_6 = arith.constant 0 : index
    %c0_7 = arith.constant 0 : index
    %8 = vector.load %arg6[%c0_6, %c0_7] : memref<16x128xf32, #tpu.memory_space<vmem>>, vector<16x128xf32>
    tpu.vector_store %arg6[%c0_6, %c0_7], %7 {strides = array<i32>} : memref<16x128xf32, #tpu.memory_space<vmem>>, vector<16x128xf32>,
    return
  }
  func.func @transform_0(%arg0: i32, %arg1: i32, %arg2: i32) -> (i32, i32) {
    %c0_i32 = arith.constant 0 : i32
    return %arg0, %arg2 : i32, i32
  }
  func.func @transform_1(%arg0: i32, %arg1: i32, %arg2: i32) -> (i32, i32) {
    %c0_i32 = arith.constant 0 : i32
    return %arg2, %arg1 : i32, i32
  }
  func.func @transform_2(%arg0: i32, %arg1: i32, %arg2: i32) -> (i32, i32) {
    %c0_i32 = arith.constant 0 : i32
    %c0_i32_0 = arith.constant 0 : i32
    return %c0_i32, %arg1 : i32, i32
  }
  func.func @transform_3(%arg0: i32, %arg1: i32, %arg2: i32) -> (i32, i32) {
    %c0_i32 = arith.constant 0 : i32
    return %arg0, %arg1 : i32, i32
  }
}

</mosaic_0001>

<bundles_post_ra>
// kernel: linear_encoder.1
= control target key start
LH: loop header
LB: loop body
LE: loop exit
PB: predicated region body
PF: predicated region fallthrough
CT: control target
= control target key end

     0   :  { %v201_v0 = vmov 0.0   ;;  %vm202_vm0 = vmmov 0   ;;  %s259_s1 = inlined_call_operand.vmem [shape: bf16[128,128], index: 1, kind: input, shape index: {}]   ;;  %s260_s0 = inlined_call_operand.vmem [shape: bf16[16,128], index: 0, kind: input, shape index: {}]   ;;  %s261_s2 = inlined_call_operand.vmem [shape: f32[1,128], index: 2, kind: input, shape index: {}]   ;;  %s262_s3 = inlined_call_operand.vmem [shape: f32[16,128], index: 3, kind: output, shape index: {}]  }
   0x1   :  { %170 = vmatprep.subr.bf16.mxu0 %v201_v0  ;;  %v192_v1 = vld [vmem:[%s259_s1] sm:$0xff]   ;;  %186 = vmatprep.mubr.msk.bf16.mxu0 %vm202_vm0, %v201_v0  ;;  %v193_v2 = vld [vmem:[%s259_s1 + $0x8] sm:$0xff]   ;;  %v194_v3 = vld [vmem:[%s259_s1 + $0x10] sm:$0xff]  }
   0x2   :  { %171 = vmatpush3.bf16.msra.mxu0 %v192_v1  ;;  %v195_v4 = vld [vmem:[%s259_s1 + $0x18] sm:$0xff]   ;;  %v196_v5 = vld [vmem:[%s259_s1 + $0x20] sm:$0xff]   ;;  %v197_v6 = vld [vmem:[%s259_s1 + $0x28] sm:$0xff]  }
   0x3   :  { %172 = vmatprep.subr.bf16.mxu0 %v201_v0  ;;  %v198_v7 = vld [vmem:[%s259_s1 + $0x30] sm:$0xff]   ;;  %v199_v8 = vld [vmem:[%s259_s1 + $0x38] sm:$0xff]   ;;  %v200_v9 = vld [vmem:[%s260_s0] sm:$0xff]  }
   0x4   :  { %v151_v10 = vld [vmem:[%s261_s2] ss:$0 sm:$0xff] }
   0x6   :  { %173 = vmatpush3.bf16.msra.mxu0 %v193_v2 }
   0x7   :  { %174 = vmatprep.subr.bf16.mxu0 %v201_v0 }
   0xa   :  { %175 = vmatpush3.bf16.msra.mxu0 %v194_v3 }
   0xb   :  { %176 = vmatprep.subr.bf16.mxu0 %v201_v0 }
   0xe   :  { %177 = vmatpush3.bf16.msra.mxu0 %v195_v4 }
   0xf   :  { %178 = vmatprep.subr.bf16.mxu0 %v201_v0 }
  0x12   :  { %179 = vmatpush3.bf16.msra.mxu0 %v196_v5 }
  0x13   :  { %180 = vmatprep.subr.bf16.mxu0 %v201_v0 }
  0x16   :  { %181 = vmatpush3.bf16.msra.mxu0 %v197_v6 }
  0x17   :  { %182 = vmatprep.subr.bf16.mxu0 %v201_v0 }
  0x1a   :  { %183 = vmatpush3.bf16.msra.mxu0 %v198_v7 }
  0x1b   :  { %184 = vmatprep.subr.bf16.mxu0 %v201_v0 }
  0x1e   :  { %185 = vmatpush3.bf16.msra.mxu0 %v199_v8 }
  0x21   :  { %187 = vmatmul.mubr.bf16.vlgmr.msra.gmra.mrb[0].mxu0 %v200_v9 }
  0xf4   :  { %v136_v11 = vpop.f32.mrb[0].mxu0 }
  0xf5   :  { %v143_v12 = vadd.f32 %v151_v10, %v136_v11  ;;  %v188_v13 = vpop.f32.mrb[1].mxu0 }
  0xf6   :  { %v139_v14 = vpop.f32.mrb[2].mxu0 }
  0xf7   :  { %145 = vst [vmem:[%s262_s3] sm:$0xff] %v143_v12  ;;  %v144_v15 = vadd.f32 %v151_v10, %v139_v14  ;;  %v189_v16 = vpop.f32.mrb[3].mxu0 }
  0xf9   :  { %146 = vst [vmem:[%s262_s3 + $0x8] sm:$0xff] %v144_v15 }

</bundles_post_ra>
